<compile_context>
chip_gen: v5e
topology: v5e:2x2
jax: 0.10.0
libtpu: 0.0.40
codegen_flags: <defaults>
</compile_context>

<pallas_src>
import functools

import jax
import jax.numpy as jnp
from jax import lax
from jax.experimental import pallas as pl
from jax.experimental.pallas import tpu as pltpu

EPS = 1e-5        # PyTorch BatchNorm default eps
NEG_INF = -1e9    # pad-class logit bias so softmax/entropy ignore padded classes


def _round_up(v, m):
    return ((v + m - 1) // m) * m


def tent_adapt_kernel(xhat_ref, w2_ref, w2t_ref, params_ref,     # inputs (all resident)
                      logits_ref,                                # output
                      gamma_s, beta_s,                           # persistent VMEM scratch
                      *, num_steps, lr, n_real):
    """Grid step s < num_steps: head forward + entropy grad + SGD update of gamma/beta.
    On the LAST grid step the post-update forward is re-run and logits are written
    (final inference pass folded into the last adaptation step)."""
    step = pl.program_id(0)
    last = pl.num_programs(0) - 1
    fp = gamma_s.shape[1]          # padded feature dim
    kp = logits_ref.shape[1]       # padded class dim
    n_pad = xhat_ref.shape[0]

    # --- init trainable BN affine params into persistent VMEM scratch ---
    @pl.when(step == 0)
    def _():
        gamma_s[...] = params_ref[0:1, 0:fp]
        beta_s[...] = params_ref[1:2, 0:fp]

    xhat = xhat_ref[...]                    # (Np, Fp) f32, precomputed, loop-invariant
    w2 = w2_ref[...]                        # (Fp, Kp) bf16
    b2 = params_ref[2:3, 0:kp]              # (1, Kp)  f32 (pad classes = NEG_INF)

    def head_forward(gamma, beta):
        a = jnp.maximum(gamma * xhat + beta, 0.0)                    # relu(y); a>0 <=> y>0
        z = jnp.dot(a.astype(jnp.bfloat16), w2,
                    preferred_element_type=jnp.float32) + b2         # (Np, Kp) f32
        return a, z

    # ---------------- adaptation step: entropy grad + SGD ----------------
    @pl.when(step < num_steps)
    def _():
        gamma = gamma_s[...]
        beta = beta_s[...]
        a, z = head_forward(gamma, beta)

        # row-validity mask: padded batch rows excluded from the mean-entropy gradient
        row_ids = lax.broadcasted_iota(jnp.int32, (n_pad, 1), 0)
        rmask = (row_ids < n_real).astype(jnp.float32)               # (Np, 1)
        inv_n = 1.0 / float(n_real)

        zmax = jnp.max(z, axis=1, keepdims=True)
        ez = jnp.exp(z - zmax)                                       # pad classes -> 0
        sez = jnp.sum(ez, axis=1, keepdims=True)
        logp = (z - zmax) - jnp.log(sez)
        p = ez / sez                                                 # exact (consistent w/ logp)
        ent = -jnp.sum(p * logp, axis=1, keepdims=True)              # (Np, 1)
        # dL/dz = -(1/N) * p * (logp + H), masked to valid rows
        dz = (-inv_n) * p * (logp + ent) * rmask                     # (Np, Kp)
        # dL/da = dz @ W2^T  (W2^T precomputed in the wrapper, no in-kernel transpose)
        da = jnp.dot(dz.astype(jnp.bfloat16), w2t_ref[...],
                     preferred_element_type=jnp.float32)             # (Np, Fp)
        dy = jnp.where(a > 0.0, da, 0.0)                             # relu grad
        gamma_s[...] = gamma - lr * jnp.sum(dy * xhat, axis=0, keepdims=True)
        beta_s[...] = beta - lr * jnp.sum(dy, axis=0, keepdims=True)

    # ---------------- last step: emit logits with the adapted params ----------------
    @pl.when(step == last)
    def _():
        _, z = head_forward(gamma_s[...], beta_s[...])               # reads post-update params
        logits_ref[...] = z


def tent_training_forward(x_nchw, params, *, num_steps=2, lr=1e-3):
    """Equivalent of TentTraining.forward(x): adapt the BN affine params by entropy
    minimization on the first B//3 slice for `num_steps` steps, then return
    model(x_slice) computed with the adapted params."""
    w1, b1, gamma, beta, w2, b2 = params
    n = x_nchw.shape[0] // 3
    if n == 0:
        raise ValueError("TentTraining expects batch size >= 3 (torch.split(x, B//3)).")
    x0 = x_nchw[:n]                                   # torch.split(x, B//3)[0]
    x2d = x0.reshape(n, -1).astype(jnp.float32)       # NCHW flattened row-major
    f = w1.shape[1]
    k = w2.shape[1]

    # ---- loop-invariant hoist (review): h, mu, var, xhat do not depend on gamma/beta,
    # so compute them ONCE in f32 here.  x and W1 never enter the pallas_call.
    h = x2d @ w1 + b1.reshape(1, -1)                  # (n, F) f32
    mu = jnp.mean(h, axis=0, keepdims=True)
    hm = h - mu                                       # reused for var AND xhat
    var = jnp.mean(hm * hm, axis=0, keepdims=True)    # biased batch var (BN train mode)
    xhat = hm * lax.rsqrt(var + EPS)                  # (n, F) f32

    # --- pad to TPU-friendly tiles (8 sublanes, 128 lanes; deliberately NOT 256) ---
    n_pad = max(8, _round_up(n, 8))
    f_pad = _round_up(f, 128)
    k_pad = _round_up(k, 128)
    width = max(f_pad, k_pad)

    xhat_p = jnp.zeros((n_pad, f_pad), jnp.float32).at[:n, :f].set(xhat)
    w2_p = jnp.zeros((f_pad, k_pad), jnp.float32).at[:f, :k].set(w2)
    w2t_p = jnp.transpose(w2_p)                       # (Kp, Fp), transposed once outside

    # pack the small per-feature params into one (8, width) buffer: one tiny DMA
    gamma_row = jnp.ones((width,), jnp.float32).at[:f].set(gamma.reshape(-1))
    beta_row = jnp.zeros((width,), jnp.float32).at[:f].set(beta.reshape(-1))
    b2_row = jnp.full((width,), NEG_INF, jnp.float32).at[:k].set(b2.reshape(-1))
    packed = (jnp.zeros((8, width), jnp.float32)
              .at[0].set(gamma_row).at[1].set(beta_row).at[2].set(b2_row))

    kernel = functools.partial(tent_adapt_kernel,
                               num_steps=num_steps, lr=float(lr), n_real=n)

    # Explicit VMEM budget: actual resident set (with default double-buffering) plus
    # headroom for compiler temporaries; keeps the layout well inside v5e's 16 MiB
    # default scoped VMEM and trivially inside v7x's 64 MiB physical VMEM.
    resident_bytes = (2 * (xhat_p.size * 4 + w2_p.size * 2 + w2t_p.size * 2
                           + packed.size * 4 + n_pad * k_pad * 4)
                      + 2 * f_pad * 4)
    vmem_limit = int(resident_bytes) + (8 << 20)

    num_grid_steps = max(num_steps, 1)                # num_steps==0 -> pure inference pass

    logits_pad = pl.pallas_call(
        kernel,
        out_shape=jax.ShapeDtypeStruct((n_pad, k_pad), jnp.float32),
        grid_spec=pltpu.PrefetchScalarGridSpec(
            num_scalar_prefetch=0,
            grid=(num_grid_steps,),
            in_specs=[
                pl.BlockSpec((n_pad, f_pad), lambda s: (0, 0)),   # xhat   (resident)
                pl.BlockSpec((f_pad, k_pad), lambda s: (0, 0)),   # W2     (resident)
                pl.BlockSpec((k_pad, f_pad), lambda s: (0, 0)),   # W2^T   (resident)
                pl.BlockSpec((8, width), lambda s: (0, 0)),       # packed small params
            ],
            out_specs=pl.BlockSpec((n_pad, k_pad), lambda s: (0, 0)),
            scratch_shapes=[
                pltpu.VMEM((1, f_pad), jnp.float32),   # gamma (trainable, persists)
                pltpu.VMEM((1, f_pad), jnp.float32),   # beta  (trainable, persists)
            ],
        ),
        compiler_params=pltpu.CompilerParams(
            dimension_semantics=("arbitrary",),        # SGD chain is serial; no megacore
            vmem_limit_bytes=vmem_limit,
        ),
    )(xhat_p, w2_p.astype(jnp.bfloat16), w2t_p.astype(jnp.bfloat16), packed)

    return logits_pad[:n, :k]


def init_params(key, d, f, k):
    k1, k2 = jax.random.split(key)
    w1 = 0.02 * jax.random.normal(k1, (d, f), jnp.float32)
    b1 = jnp.zeros((1, f), jnp.float32)
    gamma = jnp.ones((1, f), jnp.float32)    # BN affine (trainable)
    beta = jnp.zeros((1, f), jnp.float32)    # BN affine (trainable)
    w2 = 0.05 * jax.random.normal(k2, (f, k), jnp.float32)
    b2 = jnp.zeros((1, k), jnp.float32)
    return w1, b1, gamma, beta, w2, b2


if __name__ == "__main__":
    key = jax.random.PRNGKey(0)
    kx, kp = jax.random.split(key)

    B, C, H, W = 6, 4, 16, 16          # B divisible by 3 -> model sees first 2 samples
    F, K = 32, 10
    D = C * H * W

    x = jax.random.normal(kx, (B, C, H, W), jnp.float32)
    params = init_params(kp, D, F, K)

    logits = tent_training_forward(x, params, num_steps=2, lr=1e-3)
    logits = jax.block_until_ready(logits)

    assert logits.shape == (B // 3, K)
    assert bool(jnp.isfinite(logits).all())
    print("KERNEL_OK")
</pallas_src>

<mosaic_0001>
module attributes {stable_mosaic.version = 11 : i64} {
  func.func @tent_adapt_kernel(%arg0: i32, %arg1: memref<8x128xf32, #tpu.memory_space<vmem>>, %arg2: memref<128x128xbf16, #tpu.memory_space<vmem>>, %arg3: memref<128x128xbf16, #tpu.memory_space<vmem>>, %arg4: memref<8x128xf32, #tpu.memory_space<vmem>>, %arg5: memref<8x128xf32, #tpu.memory_space<vmem>>, %arg6: memref<1x128xf32, #tpu.memory_space<vmem>>, %arg7: memref<1x128xf32, #tpu.memory_space<vmem>>) attributes {dimension_semantics = [#tpu.dimension_semantics<arbitrary>], iteration_bounds = array<i64: 2>, scalar_prefetch = 0 : i64, scratch_operands = 2 : i64, tpu.core_type = #tpu.core_type<tc>, window_params = [{pipeline_mode = #tpu.pipeline_mode<synchronous>, transform_indices = @transform_0, window_bounds = array<i64: 8, 128>}, {pipeline_mode = #tpu.pipeline_mode<synchronous>, transform_indices = @transform_1, window_bounds = array<i64: 128, 128>}, {pipeline_mode = #tpu.pipeline_mode<synchronous>, transform_indices = @transform_2, window_bounds = array<i64: 128, 128>}, {pipeline_mode = #tpu.pipeline_mode<synchronous>, transform_indices = @transform_3, window_bounds = array<i64: 8, 128>}, {pipeline_mode = #tpu.pipeline_mode<synchronous>, transform_indices = @transform_4, window_bounds = array<i64: 8, 128>}]} {
    %c0_i32 = arith.constant 0 : i32
    %0 = arith.cmpi eq, %arg0, %c0_i32 : i32
    %1 = arith.extui %0 : i1 to i32
    %c0_i32_0 = arith.constant 0 : i32
    %2 = arith.cmpi ne, %1, %c0_i32_0 : i32
    scf.if %2 {
      %c0_7 = arith.constant 0 : index
      %c0_8 = arith.constant 0 : index
      %12 = vector.load %arg4[%c0_7, %c0_8] : memref<8x128xf32, #tpu.memory_space<vmem>>, vector<1x128xf32>
      %c0_9 = arith.constant 0 : index
      %c0_10 = arith.constant 0 : index
      %13 = vector.load %arg6[%c0_9, %c0_10] : memref<1x128xf32, #tpu.memory_space<vmem>>, vector<1x128xf32>
      tpu.vector_store %arg6[%c0_9, %c0_10], %12 {strides = array<i32>} : memref<1x128xf32, #tpu.memory_space<vmem>>, vector<1x128xf32>,
      %c1 = arith.constant 1 : index
      %c0_11 = arith.constant 0 : index
      %14 = vector.load %arg4[%c1, %c0_11] : memref<8x128xf32, #tpu.memory_space<vmem>>, vector<1x128xf32>
      %c0_12 = arith.constant 0 : index
      %c0_13 = arith.constant 0 : index
      %15 = vector.load %arg7[%c0_12, %c0_13] : memref<1x128xf32, #tpu.memory_space<vmem>>, vector<1x128xf32>
      tpu.vector_store %arg7[%c0_12, %c0_13], %14 {strides = array<i32>} : memref<1x128xf32, #tpu.memory_space<vmem>>, vector<1x128xf32>,
    } else {
    }
    %c0 = arith.constant 0 : index
    %c0_1 = arith.constant 0 : index
    %3 = vector.load %arg1[%c0, %c0_1] : memref<8x128xf32, #tpu.memory_space<vmem>>, vector<8x128xf32>
    %c0_2 = arith.constant 0 : index
    %c0_3 = arith.constant 0 : index
    %4 = vector.load %arg2[%c0_2, %c0_3] : memref<128x128xbf16, #tpu.memory_space<vmem>>, vector<128x128xbf16>
    %c2 = arith.constant 2 : index
    %c0_4 = arith.constant 0 : index
    %5 = vector.load %arg4[%c2, %c0_4] : memref<8x128xf32, #tpu.memory_space<vmem>>, vector<1x128xf32>
    %c2_i32 = arith.constant 2 : i32
    %6 = arith.cmpi slt, %arg0, %c2_i32 : i32
    %7 = arith.extui %6 : i1 to i32
    %c0_i32_5 = arith.constant 0 : i32
    %8 = arith.cmpi ne, %7, %c0_i32_5 : i32
    scf.if %8 {
      %c0_7 = arith.constant 0 : index
      %c0_8 = arith.constant 0 : index
      %12 = vector.load %arg6[%c0_7, %c0_8] : memref<1x128xf32, #tpu.memory_space<vmem>>, vector<1x128xf32>
      %c0_9 = arith.constant 0 : index
      %c0_10 = arith.constant 0 : index
      %13 = vector.load %arg7[%c0_9, %c0_10] : memref<1x128xf32, #tpu.memory_space<vmem>>, vector<1x128xf32>
      %14 = vector.broadcast %12 : vector<1x128xf32> to vector<8x128xf32>
      %15 = arith.mulf %14, %3 : vector<8x128xf32>
      %16 = vector.broadcast %13 : vector<1x128xf32> to vector<8x128xf32>
      %17 = arith.addf %15, %16 : vector<8x128xf32>
      %cst = arith.constant 0.000000e+00 : f32
      %18 = vector.broadcast %cst : f32 to vector<8x128xf32>
      %19 = arith.maximumf %17, %18 : vector<8x128xf32>
      %20 = arith.truncf %19 : vector<8x128xf32> to vector<8x128xbf16>
      %cst_11 = arith.constant dense<0.000000e+00> : vector<8x128xf32>
      %21 = tpu.matmul %20, %4, %cst_11 {dimension_numbers = #tpu.dot_dimension_numbers<[1], [0], [0], [1], [0, 0, 1, 1], [], []>} : vector<8x128xbf16>, vector<128x128xbf16>, vector<8x128xf32> -> vector<8x128xf32>
      %22 = vector.broadcast %5 : vector<1x128xf32> to vector<8x128xf32>
      %23 = arith.addf %21, %22 : vector<8x128xf32>
      %24 = tpu.iota {dimensions = array<i32: 0>} : vector<8x1xi32>
      %c2_i32_12 = arith.constant 2 : i32
      %25 = vector.broadcast %c2_i32_12 : i32 to vector<8x1xi32>
      %26 = arith.cmpi slt, %24, %25 : vector<8x1xi32>
      %27 = arith.extui %26 : vector<8x1xi1> to vector<8x1xi32>
      %28 = arith.sitofp %27 : vector<8x1xi32> to vector<8x1xf32>
      %cst_13 = arith.constant dense<0xFF800000> : vector<8xf32>
      %29 = vector.multi_reduction <maximumf>, %23, %cst_13 [1] : vector<8x128xf32> to vector<8xf32>
      %30 = vector.shape_cast %29 : vector<8xf32> to vector<8x1xf32>
      %31 = vector.broadcast %30 : vector<8x1xf32> to vector<8x128xf32>
      %32 = arith.subf %23, %31 : vector<8x128xf32>
      %33 = math.exp %32 : vector<8x128xf32>
      %cst_14 = arith.constant dense<0.000000e+00> : vector<8xf32>
      %34 = vector.multi_reduction <add>, %33, %cst_14 [1] : vector<8x128xf32> to vector<8xf32>
      %35 = vector.shape_cast %34 : vector<8xf32> to vector<8x1xf32>
      %36 = vector.broadcast %30 : vector<8x1xf32> to vector<8x128xf32>
      %37 = arith.subf %23, %36 : vector<8x128xf32>
      %38 = math.log %35 : vector<8x1xf32>
      %39 = vector.broadcast %38 : vector<8x1xf32> to vector<8x128xf32>
      %40 = arith.subf %37, %39 : vector<8x128xf32>
      %41 = vector.broadcast %35 : vector<8x1xf32> to vector<8x128xf32>
      %42 = arith.divf %33, %41 : vector<8x128xf32>
      %43 = arith.mulf %42, %40 : vector<8x128xf32>
      %cst_15 = arith.constant dense<0.000000e+00> : vector<8xf32>
      %44 = vector.multi_reduction <add>, %43, %cst_15 [1] : vector<8x128xf32> to vector<8xf32>
      %45 = vector.shape_cast %44 : vector<8xf32> to vector<8x1xf32>
      %cst_16 = arith.constant 0.000000e+00 : f32
      %46 = vector.broadcast %cst_16 : f32 to vector<8x1xf32>
      %47 = arith.subf %46, %45 : vector<8x1xf32>
      %cst_17 = arith.constant -5.000000e-01 : f32
      %48 = vector.broadcast %cst_17 : f32 to vector<8x128xf32>
      %49 = arith.mulf %48, %42 : vector<8x128xf32>
      %50 = vector.broadcast %47 : vector<8x1xf32> to vector<8x128xf32>
      %51 = arith.addf %40, %50 : vector<8x128xf32>
      %52 = arith.mulf %49, %51 : vector<8x128xf32>
      %53 = vector.broadcast %28 : vector<8x1xf32> to vector<8x128xf32>
      %54 = arith.mulf %52, %53 : vector<8x128xf32>
      %55 = arith.truncf %54 : vector<8x128xf32> to vector<8x128xbf16>
      %c0_18 = arith.constant 0 : index
      %c0_19 = arith.constant 0 : index
      %56 = vector.load %arg3[%c0_18, %c0_19] : memref<128x128xbf16, #tpu.memory_space<vmem>>, vector<128x128xbf16>
      %cst_20 = arith.constant dense<0.000000e+00> : vector<8x128xf32>
      %57 = tpu.matmul %55, %56, %cst_20 {dimension_numbers = #tpu.dot_dimension_numbers<[1], [0], [0], [1], [0, 0, 1, 1], [], []>} : vector<8x128xbf16>, vector<128x128xbf16>, vector<8x128xf32> -> vector<8x128xf32>
      %cst_21 = arith.constant 0.000000e+00 : f32
      %58 = vector.broadcast %cst_21 : f32 to vector<8x128xf32>
      %59 = arith.cmpf ogt, %19, %58 : vector<8x128xf32>
      %cst_22 = arith.constant 0.000000e+00 : f32
      %60 = vector.broadcast %cst_22 : f32 to vector<8x128xf32>
      %61 = arith.select %59, %57, %60 : vector<8x128xi1>, vector<8x128xf32>
      %62 = arith.mulf %61, %3 : vector<8x128xf32>
      %cst_23 = arith.constant dense<0.000000e+00> : vector<128xf32>
      %63 = vector.multi_reduction <add>, %62, %cst_23 [0] : vector<8x128xf32> to vector<128xf32>
      %64 = vector.shape_cast %63 : vector<128xf32> to vector<1x128xf32>
      %cst_24 = arith.constant 1.000000e-03 : f32
      %65 = vector.broadcast %cst_24 : f32 to vector<1x128xf32>
      %66 = arith.mulf %65, %64 : vector<1x128xf32>
      %67 = arith.subf %12, %66 : vector<1x128xf32>
      %c0_25 = arith.constant 0 : index
      %c0_26 = arith.constant 0 : index
      %68 = vector.load %arg6[%c0_25, %c0_26] : memref<1x128xf32, #tpu.memory_space<vmem>>, vector<1x128xf32>
      tpu.vector_store %arg6[%c0_25, %c0_26], %67 {strides = array<i32>} : memref<1x128xf32, #tpu.memory_space<vmem>>, vector<1x128xf32>,
      %cst_27 = arith.constant dense<0.000000e+00> : vector<128xf32>
      %69 = vector.multi_reduction <add>, %61, %cst_27 [0] : vector<8x128xf32> to vector<128xf32>
      %70 = vector.shape_cast %69 : vector<128xf32> to vector<1x128xf32>
      %cst_28 = arith.constant 1.000000e-03 : f32
      %71 = vector.broadcast %cst_28 : f32 to vector<1x128xf32>
      %72 = arith.mulf %71, %70 : vector<1x128xf32>
      %73 = arith.subf %13, %72 : vector<1x128xf32>
      %c0_29 = arith.constant 0 : index
      %c0_30 = arith.constant 0 : index
      %74 = vector.load %arg7[%c0_29, %c0_30] : memref<1x128xf32, #tpu.memory_space<vmem>>, vector<1x128xf32>
      tpu.vector_store %arg7[%c0_29, %c0_30], %73 {strides = array<i32>} : memref<1x128xf32, #tpu.memory_space<vmem>>, vector<1x128xf32>,
    } else {
    }
    %c1_i32 = arith.constant 1 : i32
    %9 = arith.cmpi eq, %arg0, %c1_i32 : i32
    %10 = arith.extui %9 : i1 to i32
    %c0_i32_6 = arith.constant 0 : i32
    %11 = arith.cmpi ne, %10, %c0_i32_6 : i32
    scf.if %11 {
      %c0_7 = arith.constant 0 : index
      %c0_8 = arith.constant 0 : index
      %12 = vector.load %arg6[%c0_7, %c0_8] : memref<1x128xf32, #tpu.memory_space<vmem>>, vector<1x128xf32>
      %c0_9 = arith.constant 0 : index
      %c0_10 = arith.constant 0 : index
      %13 = vector.load %arg7[%c0_9, %c0_10] : memref<1x128xf32, #tpu.memory_space<vmem>>, vector<1x128xf32>
      %14 = vector.broadcast %12 : vector<1x128xf32> to vector<8x128xf32>
      %15 = arith.mulf %14, %3 : vector<8x128xf32>
      %16 = vector.broadcast %13 : vector<1x128xf32> to vector<8x128xf32>
      %17 = arith.addf %15, %16 : vector<8x128xf32>
      %cst = arith.constant 0.000000e+00 : f32
      %18 = vector.broadcast %cst : f32 to vector<8x128xf32>
      %19 = arith.maximumf %17, %18 : vector<8x128xf32>
      %20 = arith.truncf %19 : vector<8x128xf32> to vector<8x128xbf16>
      %cst_11 = arith.constant dense<0.000000e+00> : vector<8x128xf32>
      %21 = tpu.matmul %20, %4, %cst_11 {dimension_numbers = #tpu.dot_dimension_numbers<[1], [0], [0], [1], [0, 0, 1, 1], [], []>} : vector<8x128xbf16>, vector<128x128xbf16>, vector<8x128xf32> -> vector<8x128xf32>
      %22 = vector.broadcast %5 : vector<1x128xf32> to vector<8x128xf32>
      %23 = arith.addf %21, %22 : vector<8x128xf32>
      %c0_12 = arith.constant 0 : index
      %c0_13 = arith.constant 0 : index
      %24 = vector.load %arg5[%c0_12, %c0_13] : memref<8x128xf32, #tpu.memory_space<vmem>>, vector<8x128xf32>
      tpu.vector_store %arg5[%c0_12, %c0_13], %23 {strides = array<i32>} : memref<8x128xf32, #tpu.memory_space<vmem>>, vector<8x128xf32>,
    } else {
    }
    return
  }
  func.func @transform_0(%arg0: i32) -> (i32, i32) {
    %c0_i32 = arith.constant 0 : i32
    %c0_i32_0 = arith.constant 0 : i32
    %c0_i32_1 = arith.constant 0 : i32
    return %c0_i32, %c0_i32_0 : i32, i32
  }
  func.func @transform_1(%arg0: i32) -> (i32, i32) {
    %c0_i32 = arith.constant 0 : i32
    %c0_i32_0 = arith.constant 0 : i32
    %c0_i32_1 = arith.constant 0 : i32
    return %c0_i32, %c0_i32_0 : i32, i32
  }
  func.func @transform_2(%arg0: i32) -> (i32, i32) {
    %c0_i32 = arith.constant 0 : i32
    %c0_i32_0 = arith.constant 0 : i32
    %c0_i32_1 = arith.constant 0 : i32
    return %c0_i32, %c0_i32_0 : i32, i32
  }
  func.func @transform_3(%arg0: i32) -> (i32, i32) {
    %c0_i32 = arith.constant 0 : i32
    %c0_i32_0 = arith.constant 0 : i32
    %c0_i32_1 = arith.constant 0 : i32
    return %c0_i32, %c0_i32_0 : i32, i32
  }
  func.func @transform_4(%arg0: i32) -> (i32, i32) {
    %c0_i32 = arith.constant 0 : i32
    %c0_i32_0 = arith.constant 0 : i32
    %c0_i32_1 = arith.constant 0 : i32
    return %c0_i32, %c0_i32_0 : i32, i32
  }
}

</mosaic_0001>

<bundles_post_ra>
// kernel: tpu_custom_call.1
= control target key start
LH: loop header
LB: loop body
LE: loop exit
PB: predicated region body
PF: predicated region fallthrough
CT: control target
= control target key end

     0   :  { %9 = vsyncpa [#allocation5], 0  ;;  %s1168_s0 = inlined_call_operand.hbm [shape: f32[8,128], index: 0, kind: input, shape index: {}]   ;;  %s1169_s1 = inlined_call_operand.hbm [shape: bf16[128,128], index: 1, kind: input, shape index: {}]   ;;  %s1170_s2 = inlined_call_operand.hbm [shape: bf16[128,128], index: 2, kind: input, shape index: {}]   ;;  %s1171_s3 = inlined_call_operand.hbm [shape: f32[8,128], index: 3, kind: input, shape index: {}]   ;;  %s1172_s4 = inlined_call_operand.hbm [shape: f32[8,128], index: 4, kind: output, shape index: {}]  }
   0x1   :  { %10 = vsyncpa [#allocation8], 0 }
   0x2   :  { %11 = vsyncpa [#allocation11], 0 }
   0x3   :  { %12 = vsyncpa [#allocation6], 0  ;;  %s1037_s15 = smov 0  }
   0x4 LB: > { %s151_s18 = sshll.u32 %s1169_s1, 4  ;;  %s1046_s19 = sadd.s32 4294967295, %s1002_s15   ;;  %s1002_s15 = sphi %s1037_s15, %s18_s15   ;;  %s152_s18 = int_to_ptr.hbm [resolvable:$true] %s151_s18 }
   0x5   : > { %p625_p0 = scmp.ge.s32.totalorder %s1002_s15, 1  ;;  %p128_p1 = scmp.lt.s32.totalorder %s1002_s15, 3 }
   0x6   : > { %p626_p2 = scmp.ne.s32.totalorder %s1046_s19, 0  ;;  %p796_p3 = scmp.eq.s32.totalorder %s1046_s19, 0 }
   0x7   : > { %p1052_p4 = pnand %p625_p0, %p128_p1  ;;  %s1004_s21 = smov [#allocation7]  }
   0x8   : > { %s153_s22 = sshll.u32 %s1004_s21, 4  ;;  %s140_s25 = sshll.u32 %s1168_s0, 4  ;;  %s154_s22 = int_to_ptr.vmem [resolvable:$true] %s153_s22  ;;  %s141_s25 = int_to_ptr.hbm [resolvable:$true] %s140_s25 }
   0x9   : > { %p783_p5 = pneg %p1052_p4  ;;  %s1005_s27 = smov [#allocation4]  }
   0xa   : > { %s142_s28 = sshll.u32 %s1005_s27, 4  ;;  %s165_s5 = sshll.u32 %s1170_s2, 4  ;;  %s143_s28 = int_to_ptr.vmem [resolvable:$true] %s142_s28  ;;  %s166_s5 = int_to_ptr.hbm [resolvable:$true] %s165_s5 }
   0xb   : > { %p1063_p6 = pnand %p796_p3, %p783_p5  ;;  %s1006_s6 = smov 64  }
   0xc   : > { %s1007_s7 = smov 4   ;;  %s1008_s8 = smov [#allocation9]  }
   0xd   : > { %789 = dma.hbm_to_vmem [thread:$0]  (!%p1063_p6), %s152_s18, 1024, %s154_s22, [#allocation8], %s1006_s6, %s1006_s6, %s1007_s7  }
   0xe   : > { %786 = dma.hbm_to_vmem [thread:$0]  (!%p1063_p6), %s141_s25, 128, %s143_s28, [#allocation5]  }
   0xf   : > { %s167_s9 = sshll.u32 %s1008_s8, 4  ;;  %s180_s12 = sshll.u32 %s1171_s3, 4  ;;  %s168_s9 = int_to_ptr.vmem [resolvable:$true] %s167_s9  ;;  %s181_s12 = int_to_ptr.hbm [resolvable:$true] %s180_s12 }
  0x10   : > { %792 = dma.hbm_to_vmem [thread:$0]  (!%p1063_p6), %s166_s5, 1024, %s168_s9, [#allocation8], %s1006_s6, %s1006_s6, %s1007_s7  }
  0x11   : > { %s1009_s13 = smov [#allocation10]   ;;  %195 = sbr.rel (%p1052_p4) target bundleno = 927 (0x39f), region = 36 }
  0x12   : > { %s182_s14 = sshll.u32 %s1009_s13, 4  ;;  %s183_s14 = int_to_ptr.vmem [resolvable:$true] %s182_s14 }
  0x13   : > { %795 = dma.hbm_to_vmem [thread:$0]  (!%p1063_p6), %s181_s12, 128, %s183_s14, [#allocation11]  }
  0x16   : > { %985 = dma.done.wait (%p796_p3), [#allocation5], 128  }
  0x17   : > { %987 = vsyncadd (%p796_p3), [#allocation5], 4294967168 }
  0x18   : > { %989 = dma.done.wait (%p796_p3), [#allocation8], 2048  }
  0x19   : > { %991 = vsyncadd (%p796_p3), [#allocation8], 4294965248 }
  0x1a   : > { %993 = dma.done.wait (%p796_p3), [#allocation11], 128  }
  0x1b   : > { %995 = vsyncadd (%p796_p3), [#allocation11], 4294967168  ;;  %230 = sbr.rel (%p626_p2) target bundleno = 35 (0x23), region = 56 }
  0x20   : > { %v231_v0 = vld [vmem:[#allocation10] sm:$0x1]  ;;  %v233_v1 = vld [vmem:[#allocation10 + $0x1] sm:$0x1] }
  0x21   : > { %232 = vst [vmem:[#allocation2] sm:$0x1] %v231_v0 }
  0x22   : > { %234 = vst [vmem:[#allocation3] sm:$0x1] %v233_v1 }
  0x23 PF: > { %v1097_v2 = vld [vmem:[#allocation4] sm:$0xff]  ;;  %v1099_v3 = vld [vmem:[#allocation7] sm:$0xf]  ;;  %v1101_v5 = vld [vmem:[#allocation7] sm:$0xf0]  ;;  %p636_p7 = scmp.ge.s32.totalorder %s1046_s19, 2 }
  0x24   : > { %v639_v4 = vld [vmem:[#allocation7] sm:$0xf]  ;;  %v740_v6 = vld [vmem:[#allocation7] sm:$0xf0]  ;;  %v1103_v7 = vld [vmem:[#allocation7 + $0x8] sm:$0xf] }
  0x25   : > { %v643_v8 = vld [vmem:[#allocation7 + $0x8] sm:$0xf]  ;;  %v1105_v9 = vld [vmem:[#allocation7 + $0x8] sm:$0xf0]  ;;  %v1107_v11 = vld [vmem:[#allocation7 + $0x10] sm:$0xf] }
  0x26   : > { %v742_v10 = vld [vmem:[#allocation7 + $0x8] sm:$0xf0]  ;;  %v647_v12 = vld [vmem:[#allocation7 + $0x10] sm:$0xf]  ;;  %v1109_v13 = vld [vmem:[#allocation7 + $0x10] sm:$0xf0] }
  0x27   : > { %v744_v14 = vld [vmem:[#allocation7 + $0x10] sm:$0xf0]  ;;  %v1111_v15 = vld [vmem:[#allocation7 + $0x18] sm:$0xf]  ;;  %v1113_v17 = vld [vmem:[#allocation7 + $0x18] sm:$0xf0] }
  0x28   : > { %v651_v16 = vld [vmem:[#allocation7 + $0x18] sm:$0xf]  ;;  %v746_v18 = vld [vmem:[#allocation7 + $0x18] sm:$0xf0]  ;;  %v1115_v19 = vld [vmem:[#allocation7 + $0x20] sm:$0xf] }
  0x29   : > { %v655_v20 = vld [vmem:[#allocation7 + $0x20] sm:$0xf]  ;;  %v1117_v21 = vld [vmem:[#allocation7 + $0x20] sm:$0xf0]  ;;  %v1119_v23 = vld [vmem:[#allocation7 + $0x28] sm:$0xf] }
  0x2a   : > { %v748_v22 = vld [vmem:[#allocation7 + $0x20] sm:$0xf0]  ;;  %v659_v24 = vld [vmem:[#allocation7 + $0x28] sm:$0xf]  ;;  %v1121_v25 = vld [vmem:[#allocation7 + $0x28] sm:$0xf0] }
  0x2b   : > { %v750_v26 = vld [vmem:[#allocation7 + $0x28] sm:$0xf0]  ;;  %v1123_v27 = vld [vmem:[#allocation7 + $0x30] sm:$0xf]  ;;  %v1125_v29 = vld [vmem:[#allocation7 + $0x30] sm:$0xf0] }
  0x2c   : > { %v663_v28 = vld [vmem:[#allocation7 + $0x30] sm:$0xf]  ;;  %v752_v30 = vld [vmem:[#allocation7 + $0x30] sm:$0xf0]  ;;  %v1127_v31 = vld [vmem:[#allocation7 + $0x38] sm:$0xf] }
  0x2d   : > { %v667_v32 = vld [vmem:[#allocation7 + $0x38] sm:$0xf]  ;;  %v1129_v33 = vld [vmem:[#allocation7 + $0x38] sm:$0xf0]  ;;  %v1131_v35 = vld [vmem:[#allocation10 + $0x2] sm:$0x1] }
  0x2e   : > { %v754_v34 = vld [vmem:[#allocation7 + $0x38] sm:$0xf0]  ;;  %256 = sbr.rel (%p636_p7) target bundleno = 748 (0x2ec), region = 60 }
  0x33   : > { %v668_v36 = vor.u32 %v754_v34, %v667_v32  ;;  %v664_v37 = vor.u32 %v752_v30, %v663_v28  ;;  %v660_v38 = vor.u32 %v750_v26, %v659_v24  ;;  %v656_v39 = vor.u32 %v748_v22, %v655_v20  ;;  %v822_v40 = vld [vmem:[#allocation2] ss:$0 sm:$0xff]  ;;  %v823_v43 = vld [vmem:[#allocation3] ss:$0 sm:$0xff]  ;;  %v762_v58 = vld [vmem:[#allocation9 + $0x38] sm:$0xff] }
  0x34   : > { %v652_v41 = vor.u32 %v746_v18, %v651_v16  ;;  %v262_v42 = vmul.f32 %v822_v40, %v1097_v2  ;;  %v648_v44 = vor.u32 %v744_v14, %v647_v12  ;;  %v644_v46 = vor.u32 %v742_v10, %v643_v8  ;;  %434 = vmatpush.bf16.msra.mxu1 %v762_v58  ;;  %v761_v59 = vld [vmem:[#allocation9 + $0x30] sm:$0xff]  ;;  %v760_v60 = vld [vmem:[#allocation9 + $0x28] sm:$0xff]  ;;  %v759_v62 = vld [vmem:[#allocation9 + $0x20] sm:$0xff] }
  0x35   : > { %318 = vmatpush.bf16.msra.mxu0 %v668_v36  ;;  %v640_v48 = vor.u32 %v740_v6, %v639_v4  ;;  %v269_v50 = vperm.slane %v1131_v35, 0  ;;  %v758_v63 = vld [vmem:[#allocation9 + $0x18] sm:$0xff]  ;;  %v757_v4 = vld [vmem:[#allocation9 + $0x10] sm:$0xff]  ;;  %v756_v32 = vld [vmem:[#allocation9 + $0x8] sm:$0xff]  ;;  %v331_v36 = vlaneseq }
  0x36   : > { %v266_v45 = vadd.f32 %v823_v43, %v262_v42  ;;  %v755_v34 = vld [vmem:[#allocation9] sm:$0xff]  ;;  %v1010_v42 = vmov 0.0  }
  0x38   : > { %v1135_v47 = vmax.f32 %v266_v45, 0.0  ;;  %435 = vmatpush.bf16.msra.mxu1 %v761_v59 }
  0x39   : > { %319 = vmatpush.bf16.msra.mxu0 %v664_v37  ;;  %v332_v37 = vshrl.u32 %v331_v36, 7 }
  0x3a   : > { %v268_v49 = vpack.c.bf16 %v1135_v47, %v1135_v47  ;;  %vm447_vm5 = vcmp.gt.f32.partialorder %v1135_v47, 0.0  ;;  %v257_v47 = vld [vmem:[#allocation2] sm:$0x1] }
  0x3b   : > { %vm333_vm4 = vcmp.lt.s32.totalorder %v332_v37, 2 }
  0x3c   : > { %436 = vmatpush.bf16.msra.mxu1 %v760_v60  ;;  %v669_v43 = vsel %vm333_vm4, 1.0, %v1010_v42 }
  0x3d   : > { %320 = vmatpush.bf16.msra.mxu0 %v660_v38 }
  0x40   : > { %437 = vmatpush.bf16.msra.mxu1 %v759_v62 }
  0x41   : > { %321 = vmatpush.bf16.msra.mxu0 %v656_v39 }
  0x44   : > { %438 = vmatpush.bf16.msra.mxu1 %v758_v63  ;;  %v258_v63 = vld [vmem:[#allocation3] sm:$0x1] }
  0x45   : > { %322 = vmatpush.bf16.msra.mxu0 %v652_v41 }
  0x48   : > { %439 = vmatpush.bf16.msra.mxu1 %v757_v4 }
  0x49   : > { %323 = vmatpush.bf16.msra.mxu0 %v648_v44 }
  0x4c   : > { %440 = vmatpush.bf16.msra.mxu1 %v756_v32 }
  0x4d   : > { %324 = vmatpush.bf16.msra.mxu0 %v644_v46 }
  0x50   : > { %441 = vmatpush.bf16.msra.mxu1 %v755_v34 }
  0x51   : > { %325 = vmatpush.bf16.msra.mxu0 %v640_v48 }
  0x54   : > { %326 = vmatmul.bf16.vlgmr.msra.gmra.mxu0 %v268_v49 }
  0xd1   : > { %v327_v51 = vpop.f32.mrf.mxu0 }
  0xd2   : > { %v328_v52 = vadd.f32 %v327_v51, %v269_v50 }
  0xd4   : > { %336 = vmax.xlane.f32.xlu0 %v328_v52 }
  0xd9   : > { %v329_v53 = vpop.f32.mrf.mxu0 }
 0x147   : > { %v337_v54 = vpop.xlane.xlu0 %336 }
 0x148   : > { %v338_v55 = vsub.f32 %v328_v52, %v337_v54 }
 0x14a   : > { %v339_v56 = vmul.f32 1.442695, %v338_v55 }
 0x14c   : > { %824 = vpow2.f32 %v339_v56 }
 0x152   : > { %v825_v57 = vpop.eup %824 }
 0x153   : > { %341 = vadd.xlane.f32.xlu0 %v825_v57 }
 0x1c6   : > { %v342_v61 = vpop.xlane.xlu0 %341 }
 0x1c7   : > { %826 = vrcp.f32 %v342_v61  ;;  %v357_v10 = vand.u32 2147483648, %v342_v61  ;;  %v355_v14 = vand.u32 2147483647, %v342_v61  ;;  %vm351_vm1 = vweird.f32 %v342_v61 }
 0x1c8   : > { %828 = vlog2.f32 %v342_v61 }
 0x1c9   : > { %v358_v20 = vor.u32 1.1754944e-38, %v357_v10  ;;  %vm356_vm3 = vcmp.eq.f32.partialorder %v355_v14, 8.507059e+37 }
 0x1cd   : > { %v827_v0 = vpop.eup %826 }
 0x1ce   : > { %v347_v1 = vmul.f32 %v827_v0, %v342_v61  ;;  %v829_v8 = vpop.eup %828  ;;  %vm352_vm0 = vweird.f32 %v827_v0 }
 0x1cf   : > { %v344_v16 = vmul.f32 0.6931472, %v829_v8  ;;  %vm353_vm2 = vmor %vm351_vm1, %vm352_vm0 }
 0x1d0   : > { %v348_v6 = vsub.f32 1.0, %v347_v1 }
 0x1d1   : > { %v345_v26 = vsub.f32 %v338_v55, %v344_v16 }
 0x1d2   : > { %v349_v12 = vmul.f32 %v827_v0, %v348_v6 }
 0x1d4   : > { %v350_v18 = vadd.f32 %v827_v0, %v349_v12 }
 0x1d6   : > { %v354_v22 = vsel %vm353_vm2, %v827_v0, %v350_v18 }
 0x1d7   : > { %v359_v24 = vsel %vm356_vm3, %v358_v20, %v354_v22 }
 0x1d8   : > { %v360_v28 = vmul.f32 %v825_v57, %v359_v24 }
 0x1da   : > { %v361_v30 = vmul.f32 %v360_v28, %v345_v26  ;;  %v365_v40 = vmul.f32 -0.5, %v360_v28 }
 0x1dc   : > { %362 = vadd.xlane.f32.xlu1 %v361_v30 }
 0x24f   : > { %v363_v38 = vpop.xlane.xlu1 %362 }
 0x250   : > { %v364_v39 = vsub.f32 0.0, %v363_v38 }
 0x252   : > { %v366_v41 = vadd.f32 %v364_v39, %v345_v26 }
 0x254   : > { %v367_v44 = vmul.f32 %v366_v41, %v365_v40 }
 0x256   : > { %v368_v45 = vmul.f32 %v669_v43, %v367_v44 }
 0x258   : > { %v369_v46 = vpack.c.bf16 %v368_v45, %v368_v45 }
 0x25a   : > { %442 = vmatmul.bf16.vlgmr.msra.gmra.mxu1 %v369_v46 }
 0x2d7   : > { %v443_v48 = vpop.f32.mrf.mxu1 }
 0x2d8   : > { %v448_v49 = vsel %vm447_vm5, %v443_v48, 0.0 }
 0x2d9   : > { %v449_v50 = vmul.f32 %v448_v49, %v1097_v2  ;;  %v459_v51 = vrot.slane %v448_v49, 4 }
 0x2db   : > { %v450_v52 = vrot.slane %v449_v50, 4  ;;  %v460_v53 = vadd.f32 %v459_v51, %v448_v49 }
 0x2dd   : > { %v451_v54 = vadd.f32 %v450_v52, %v449_v50  ;;  %v461_v55 = vrot.slane %v460_v53, 2 }
 0x2df   : > { %v452_v56 = vrot.slane %v451_v54, 2  ;;  %v462_v57 = vadd.f32 %v461_v55, %v460_v53  ;;  %v445_v58 = vpop.f32.mrf.mxu1 }
 0x2e1   : > { %v453_v59 = vadd.f32 %v452_v56, %v451_v54  ;;  %v463_v60 = vrot.slane %v462_v57, 1 }
 0x2e3   : > { %v454_v61 = vrot.slane %v453_v59, 1  ;;  %v464_v62 = vadd.f32 %v463_v60, %v462_v57 }
 0x2e5   : > { %v455_v0 = vadd.f32 %v454_v61, %v453_v59  ;;  %v465_v1 = vmul.f32 0.001, %v464_v62 }
 0x2e7   : > { %v456_v4 = vmul.f32 0.001, %v455_v0  ;;  %v466_v6 = vsub.f32 %v258_v63, %v465_v1 }
 0x2e9   : > { %v457_v8 = vsub.f32 %v257_v47, %v456_v4  ;;  %467 = vst [vmem:[#allocation3] sm:$0x1] %v466_v6 }
 0x2eb   : > { %458 = vst [vmem:[#allocation2] sm:$0x1] %v457_v8 }
 0x2ec PF: > { %p702_p8 = scmp.ne.s32.totalorder %s1046_s19, 1 }
 0x2ee   : > { %471 = sbr.rel (%p702_p8) target bundleno = 922 (0x39a), region = 64 }
 0x2f3   : > { %v734_v10 = vor.u32 %v1129_v33, %v1127_v31  ;;  %v730_v12 = vor.u32 %v1125_v29, %v1123_v27  ;;  %v726_v14 = vor.u32 %v1121_v25, %v1119_v23  ;;  %v722_v16 = vor.u32 %v1117_v21, %v1115_v19  ;;  %v830_v18 = vld [vmem:[#allocation2] ss:$0 sm:$0xff]  ;;  %v831_v31 = vld [vmem:[#allocation3] ss:$0 sm:$0xff] }
 0x2f4   : > { %v718_v20 = vor.u32 %v1113_v17, %v1111_v15  ;;  %v477_v22 = vmul.f32 %v830_v18, %v1097_v2  ;;  %v714_v27 = vor.u32 %v1109_v13, %v1107_v11  ;;  %v710_v23 = vor.u32 %v1105_v9, %v1103_v7 }
 0x2f5   : > { %533 = vmatpush.bf16.msra.mxu0 %v734_v10  ;;  %v706_v19 = vor.u32 %v1101_v5, %v1099_v3  ;;  %v484_v2 = vperm.slane %v1131_v35, 0 }
 0x2f6   : > { %v481_v29 = vadd.f32 %v831_v31, %v477_v22 }
 0x2f8   : > { %v482_v25 = vmax.f32 %v481_v29, 0.0 }
 0x2f9   : > { %534 = vmatpush.bf16.msra.mxu0 %v730_v12 }
 0x2fa   : > { %v483_v21 = vpack.c.bf16 %v482_v25, %v482_v25 }
 0x2fd   : > { %535 = vmatpush.bf16.msra.mxu0 %v726_v14 }
 0x301   : > { %536 = vmatpush.bf16.msra.mxu0 %v722_v16 }
 0x305   : > { %537 = vmatpush.bf16.msra.mxu0 %v718_v20 }
 0x309   : > { %538 = vmatpush.bf16.msra.mxu0 %v714_v27 }
 0x30d   : > { %539 = vmatpush.bf16.msra.mxu0 %v710_v23 }
 0x311   : > { %540 = vmatpush.bf16.msra.mxu0 %v706_v19 }
 0x314   : > { %541 = vmatmul.bf16.vlgmr.msra.gmra.mxu0 %v483_v21 }
 0x391   : > { %v542_v15 = vpop.f32.mrf.mxu0 }
 0x392   : > { %v543_v17 = vadd.f32 %v542_v15, %v484_v2 }
 0x394   : > { %546 = vst [vmem:[#allocation12] sm:$0xff] %v543_v17 }
 0x399   : > { %v544_v33 = vpop.f32.mrf.mxu0 }
 0x39a PF: > { %p804_p9 = scmp.eq.s32.totalorder %s1046_s19, 1  ;;  %s1011_s16 = smov [#allocation12]  }
 0x39b   : > { %s553_s17 = sshll.u32 %s1011_s16, 4  ;;  %s555_s21 = sshll.u32 %s1172_s4, 4  ;;  %s554_s17 = int_to_ptr.vmem [resolvable:$true] %s553_s17  ;;  %s556_s21 = int_to_ptr.hbm [resolvable:$true] %s555_s21 }
 0x39c   : > { %780 = dma.vmem_to_hbm [thread:$0]  (%p804_p9), %s554_s17, 128, %s556_s21, [#allocation6]  }
 0x39d   : > { %997 = dma.done.wait (%p804_p9), [#allocation6], 128  }
 0x39e   : > { %999 = vsyncadd (%p804_p9), [#allocation6], 4294967168 }
 0x39f PF: > { %s18_s15 = sadd.s32 1, %s1002_s15  }
 0x3a0   : > { %p15_p10 = scmp.ge.s32.totalorder %s18_s15, 4  }
 0x3a2   :  { %17 = sbr.rel (!%p15_p10) target bundleno = 4 (0x4), region = 89 }
 0x3a7   :  { %569 = vsyncpa [#allocation5], 1 }
 0x3a8   :  { %571 = vsyncpa [#allocation5 + $0x1], 1 }
 0x3a9   :  { %572 = vsyncpa [#allocation8], 1 }
 0x3aa   :  { %573 = vsyncpa [#allocation11], 1 }
 0x3ab   :  { %574 = vsyncpa [#allocation6], 1 }
 0x3ac   :  { %576 = vsyncpa [#allocation6 + $0x1], 1 }

</bundles_post_ra>
